<compile_context>
chip_gen: v7x
topology: tpu7x:2x2x1
jax: 0.10.0
libtpu: 0.0.40
codegen_flags: <defaults>
</compile_context>

<pallas_src>
import jax
import jax.numpy as jnp
from jax import lax
from jax.experimental import pallas as pl
from jax.experimental.pallas import tpu as pltpu


# ----------------------------- helpers ---------------------------------------


def _softplus(x):
    # matches torch.nn.functional.softplus (beta=1, threshold=20)
    return jnp.where(x > 20.0, x, jnp.log1p(jnp.exp(jnp.minimum(x, 20.0))))


def _round_up(x, m):
    return ((x + m - 1) // m) * m


def _tpu_vmem_capacity():
    # Conservative fallback (v7x has only 64 MiB) if the query is unavailable.
    try:
        info = pltpu.get_tpu_info()
        return int(getattr(info, "vmem_capacity_bytes", 64 * 1024 * 1024))
    except Exception:
        return 64 * 1024 * 1024


def _pick_block_config(b_sz, n_ctx_p, n_tgt_p, hidden, d_out_pad, param_bytes):
    """Generation-aware batch-block size and VMEM limit."""
    vmem_cap = _tpu_vmem_capacity()            # 64 MiB on v7x, 128 MiB v5e/v6e
    vmem_limit = min(vmem_cap * 3 // 4, 100 * 1024 * 1024)

    # Rows-per-block target: big tiles amortize the ~0.35us per-grid-step cost
    # on the 128 MiB parts; stay smaller on v7x (64 MiB VMEM).
    rows_target = 2048 if vmem_cap >= 96 * 1024 * 1024 else 1024
    rows = max(n_ctx_p, n_tgt_p, 1)
    b_blk = max(1, rows_target // rows)

    # Respect an explicit per-block VMEM budget:
    #   double-buffered obs/tgt/mask/out blocks (narrow arrays lane-pad to 128)
    #   + double-buffered params + f32 activation headroom.
    per_batch = (2 * (n_ctx_p * 128 * 2            # obs block (bf16)
                      + n_tgt_p * 128 * 2          # tgt block (bf16)
                      + n_ctx_p * 128 * 4          # mask block (f32)
                      + n_tgt_p * d_out_pad * 4)   # out block (f32)
                 + 6 * max(n_ctx_p, n_tgt_p) * max(hidden, 128) * 4)
    budget = max(vmem_limit - 2 * param_bytes - (4 << 20), 1 << 20)
    b_blk = min(b_blk, max(1, budget // per_batch))

    # Keep >= 2 grid blocks so both v7x TensorCores (and the software
    # pipeline) have work; costs only one extra ~0.35us step on 1-core parts.
    if b_sz >= 2:
        b_blk = min(b_blk, pl.cdiv(b_sz, 2))
    return max(1, min(b_blk, b_sz)), vmem_limit


# ----------------------------- kernel ----------------------------------------


def _make_cnp_kernel(n_enc_layers, n_qry_layers, d_y, min_std,
                     b_blk, n_ctx, n_tgt, d_x, matmul_dtype):
    n_enc_refs = 2 * n_enc_layers
    n_qry_refs = 2 * n_qry_layers + 1   # first decoder weight split: W_r / W_t
    use_fma_first_qry = d_x <= 8        # tiny-K: do tgt @ W_t on the VPU
    rows_t = b_blk * n_tgt

    def kernel(obs_ref, tgt_ref, mask_ref, inv_norm_ref, *rest):
        enc_refs = rest[:n_enc_refs]
        qry_refs = rest[n_enc_refs:n_enc_refs + n_qry_refs]
        out_ref = rest[-1]

        # ---- encoder MLP: bf16 matmul inputs, f32 accumulate / elementwise --
        h = obs_ref[0]                                  # (rows_c, d_in) bf16
        for i in range(n_enc_layers):
            w = enc_refs[2 * i][...]                    # (fan_in, H) bf16
            b = enc_refs[2 * i + 1][...]                # (1, H) f32
            h = jnp.dot(h, w, preferred_element_type=jnp.float32) + b
            if i < n_enc_layers - 1:
                h = jnp.maximum(h, 0.0).astype(matmul_dtype)
        # h: (rows_c, H) f32
        hidden = h.shape[-1]

        # ---- masked mean over context: VPU mask-multiply + sublane-split ----
        # reshape + sum over the n_ctx axis (linear in b_blk, no MXU pass).
        hm = h * mask_ref[0]                            # (rows_c, H) * (rows_c, 1)
        h3 = hm.reshape(b_blk, n_ctx, hidden)           # layout-preserving (n_ctx%8==0)
        h_sum = jnp.sum(h3, axis=1)                     # (b_blk, H) f32
        r = h_sum * inv_norm_ref[0]                     # 1/count computed in wrapper

        # ---- decoder first layer: split weights, no broadcast/concat --------
        w_r = qry_refs[0][...]                          # (H, H) bf16
        b0 = qry_refs[2][...]                           # (1, H) f32
        r_proj = jnp.dot(r.astype(matmul_dtype), w_r,
                         preferred_element_type=jnp.float32) + b0   # (b_blk, H)

        # expand r_proj over targets with a sublane broadcast (no MXU matmul)
        r_exp = jnp.broadcast_to(r_proj[:, None, :], (b_blk, n_tgt, hidden))
        r_exp = r_exp.reshape(rows_t, hidden)           # layout-preserving (n_tgt%8==0)

        if use_fma_first_qry:
            # tgt @ W_t as d_x broadcast-FMAs on the VPU (f32; no tiny-K MXU pass)
            tgt = tgt_ref[0].astype(jnp.float32)        # (rows_t, d_x)
            w_t = qry_refs[1][...].astype(jnp.float32)  # (d_x, H)
            q = r_exp
            for k in range(d_x):
                q = q + tgt[:, k:k + 1] * w_t[k:k + 1, :]
        else:
            q = r_exp + jnp.dot(tgt_ref[0], qry_refs[1][...],
                                preferred_element_type=jnp.float32)
        if n_qry_layers > 1:
            q = jnp.maximum(q, 0.0)

        # ---- remaining decoder layers ----------------------------------------
        for i in range(1, n_qry_layers):
            w = qry_refs[2 * i + 1][...]
            b = qry_refs[2 * i + 2][...]
            q = jnp.dot(q.astype(matmul_dtype), w,
                        preferred_element_type=jnp.float32) + b
            if i < n_qry_layers - 1:
                q = jnp.maximum(q, 0.0)
        # q: (rows_t, d_out_pad) f32; cols [0,d_y)=mean, [d_y,2*d_y)=logstd,
        # remaining columns are zero padding (discarded by the wrapper).

        # ---- single lane-dense (128-wide) output slab -------------------------
        col = lax.broadcasted_iota(jnp.int32, q.shape, 1)
        out_ref[0] = jnp.where(col < d_y, q, _softplus(q) + min_std)

    return kernel


# ----------------------------- wrapper ----------------------------------------


def cnp_forward(observation, target, observation_mask, enc_params, qry_params,
                d_y, min_std, b_blk=None, matmul_dtype=jnp.bfloat16):
    """Pallas CNP forward.

    observation: (B, n_context, d_x + d_y) f32
    target:      (B, n_target, d_x) f32
    observation_mask: (B, n_context) f32 or None
    enc_params / qry_params: list of (W, b), W: (fan_in, fan_out), b: (fan_out,)
    returns (mean, std): each (B, n_target, d_y) f32

    Note: as in the PyTorch reference, a real batch row whose mask is all
    zeros produces inf/NaN (0/0) — callers must provide >=1 valid context
    point per row.
    """
    b_sz, n_ctx, d_in = observation.shape
    _, n_tgt, d_x = target.shape
    hidden = enc_params[-1][0].shape[1]
    d_out_pad = _round_up(2 * d_y, 128)

    if observation_mask is None:
        observation_mask = jnp.ones((b_sz, n_ctx), jnp.float32)

    obs = observation.astype(jnp.float32)
    tgt = target.astype(jnp.float32)
    mask = observation_mask.astype(jnp.float32)

    # --- pad context/target lengths to multiples of 8 (sublane) so in-kernel
    #     reshapes (rows, H) <-> (b_blk, n, H) are layout-preserving -----------
    n_ctx_p = _round_up(n_ctx, 8)
    n_tgt_p = _round_up(n_tgt, 8)
    if n_ctx_p != n_ctx:
        obs = jnp.pad(obs, ((0, 0), (0, n_ctx_p - n_ctx), (0, 0)))
        mask = jnp.pad(mask, ((0, 0), (0, n_ctx_p - n_ctx)))   # zeros: excluded
    if n_tgt_p != n_tgt:
        tgt = jnp.pad(tgt, ((0, 0), (0, n_tgt_p - n_tgt), (0, 0)))

    # --- flatten params: bf16 weights, f32 biases; pad last decoder layer to
    #     a lane-dense 128-wide output; split first decoder weight (W_r, W_t) -
    def _prep_w(w):
        return jnp.asarray(w, jnp.float32).astype(matmul_dtype)

    def _prep_b(b):
        return jnp.asarray(b, jnp.float32).reshape(1, -1)

    qry = [(jnp.asarray(w, jnp.float32), jnp.asarray(b, jnp.float32))
           for (w, b) in qry_params]
    w_last, b_last = qry[-1]
    pad_cols = d_out_pad - w_last.shape[1]
    qry[-1] = (jnp.pad(w_last, ((0, 0), (0, pad_cols))),
               jnp.pad(b_last, ((0, pad_cols),)))

    flat_params = []
    for (w, b) in enc_params:
        flat_params += [_prep_w(w), _prep_b(b)]
    w0, b0 = qry[0]
    flat_params += [_prep_w(w0[:hidden, :]),     # W_r (H, H)
                    _prep_w(w0[hidden:, :]),     # W_t (d_x, H)
                    _prep_b(b0)]
    for (w, b) in qry[1:]:
        flat_params += [_prep_w(w), _prep_b(b)]
    param_bytes = sum(int(p.size) * p.dtype.itemsize for p in flat_params)

    # --- generation-aware block size / VMEM limit -----------------------------
    b_blk_auto, vmem_limit = _pick_block_config(
        b_sz, n_ctx_p, n_tgt_p, hidden, d_out_pad, param_bytes)
    if b_blk is None:
        b_blk = b_blk_auto
    b_blk = max(1, min(b_blk, b_sz))
    num_blocks = pl.cdiv(b_sz, b_blk)
    b_pad = num_blocks * b_blk

    if b_pad != b_sz:
        pad = b_pad - b_sz
        obs = jnp.pad(obs, ((0, pad), (0, 0), (0, 0)))
        tgt = jnp.pad(tgt, ((0, pad), (0, 0), (0, 0)))
        # pad batch rows of the mask with ones -> non-zero normalizer
        mask = jnp.pad(mask, ((0, pad), (0, 0)), constant_values=1.0)

    # per-batch 1/count computed here (no in-kernel cross-lane reduce / divide)
    inv_norm = 1.0 / mask.sum(axis=1)                      # (b_pad,)

    rows_c = b_blk * n_ctx_p
    rows_t = b_blk * n_tgt_p

    obs_blocks = obs.astype(matmul_dtype).reshape(num_blocks, rows_c, d_in)
    tgt_blocks = tgt.astype(matmul_dtype).reshape(num_blocks, rows_t, d_x)
    mask_blocks = mask.reshape(num_blocks, rows_c, 1)
    inv_blocks = inv_norm.astype(jnp.float32).reshape(num_blocks, b_blk, 1)

    in_specs = [
        pl.BlockSpec((1, rows_c, d_in), lambda i: (i, 0, 0)),
        pl.BlockSpec((1, rows_t, d_x), lambda i: (i, 0, 0)),
        pl.BlockSpec((1, rows_c, 1), lambda i: (i, 0, 0)),
        pl.BlockSpec((1, b_blk, 1), lambda i: (i, 0, 0)),
    ]
    # NOTE: params are grid-invariant (index_map == (0, 0)); default
    # double-buffering wastes a little VMEM but is negligible at these sizes.
    for p in flat_params:
        in_specs.append(pl.BlockSpec(p.shape, lambda i: (0, 0)))

    out_specs = pl.BlockSpec((1, rows_t, d_out_pad), lambda i: (i, 0, 0))
    out_shape = jax.ShapeDtypeStruct((num_blocks, rows_t, d_out_pad),
                                     jnp.float32)

    kernel = _make_cnp_kernel(len(enc_params), len(qry_params), d_y, min_std,
                              b_blk, n_ctx_p, n_tgt_p, d_x, matmul_dtype)

    # advisory cost estimate for the XLA scheduler
    rows_c_total = b_pad * n_ctx_p
    rows_t_total = b_pad * n_tgt_p
    flops = 0
    for (w, _) in enc_params:
        flops += 2 * rows_c_total * int(w.shape[0]) * int(w.shape[1])
    for (w, _) in qry_params:
        flops += 2 * rows_t_total * int(w.shape[0]) * int(w.shape[1])
    bytes_accessed = int(obs_blocks.size * 2 + tgt_blocks.size * 2
                         + mask_blocks.size * 4 + inv_blocks.size * 4
                         + param_bytes + rows_t_total * d_out_pad * 4)
    cost = pl.CostEstimate(flops=int(flops),
                           transcendentals=int(rows_t_total * d_out_pad),
                           bytes_accessed=bytes_accessed)

    out = pl.pallas_call(
        kernel,
        out_shape=out_shape,
        grid_spec=pltpu.PrefetchScalarGridSpec(
            num_scalar_prefetch=0,
            grid=(num_blocks,),
            in_specs=in_specs,
            out_specs=out_specs,
        ),
        compiler_params=pltpu.CompilerParams(
            dimension_semantics=("parallel",),
            vmem_limit_bytes=int(vmem_limit),
        ),
        cost_estimate=cost,
    )(obs_blocks, tgt_blocks, mask_blocks, inv_blocks, *flat_params)

    out = out.reshape(b_pad, n_tgt_p, d_out_pad)[:b_sz, :n_tgt]
    mean = out[..., :d_y]
    std = out[..., d_y:2 * d_y]
    return mean, std


# ----------------------------- parameter init ---------------------------------


def _init_linear(key, fan_in, fan_out):
    # PyTorch-style uniform(-1/sqrt(fan_in), 1/sqrt(fan_in))
    kw, kb = jax.random.split(key)
    bound = 1.0 / jnp.sqrt(fan_in)
    w = jax.random.uniform(kw, (fan_in, fan_out), jnp.float32, -bound, bound)
    b = jax.random.uniform(kb, (fan_out,), jnp.float32, -bound, bound)
    return w, b


def init_cnp_params(key, d_x, d_y, hidden_size, num_hidden_layers):
    enc_params, qry_params = [], []
    dims = [(d_x + d_y, hidden_size)]
    dims += [(hidden_size, hidden_size)] * (num_hidden_layers - 1)
    dims += [(hidden_size, hidden_size)]
    for (fi, fo) in dims:
        key, sub = jax.random.split(key)
        enc_params.append(_init_linear(sub, fi, fo))
    dims = [(hidden_size + d_x, hidden_size)]
    dims += [(hidden_size, hidden_size)] * (num_hidden_layers - 1)
    dims += [(hidden_size, 2 * d_y)]
    for (fi, fo) in dims:
        key, sub = jax.random.split(key)
        qry_params.append(_init_linear(sub, fi, fo))
    return enc_params, qry_params


# ----------------------------- pure-JAX reference ------------------------------


def cnp_forward_ref(obs, tgt, mask, enc_params, qry_params, d_y, min_std,
                    matmul_dtype=jnp.float32):
    def mm(x, w):
        return jnp.dot(x.astype(matmul_dtype),
                       jnp.asarray(w, jnp.float32).astype(matmul_dtype),
                       preferred_element_type=jnp.float32)

    h = obs.astype(jnp.float32)
    for i, (w, b) in enumerate(enc_params):
        h = mm(h, w) + b
        if i < len(enc_params) - 1:
            h = jnp.maximum(h, 0.0)
    if mask is None:
        r = h.mean(axis=1)
    else:
        r = (h * mask[..., None]).sum(axis=1) / mask.sum(axis=1, keepdims=True)
    r = jnp.repeat(r[:, None, :], tgt.shape[1], axis=1)
    q = jnp.concatenate([r, tgt.astype(jnp.float32)], axis=-1)
    for i, (w, b) in enumerate(qry_params):
        q = mm(q, w) + b
        if i < len(qry_params) - 1:
            q = jnp.maximum(q, 0.0)
    mean = q[..., :d_y]
    std = _softplus(q[..., d_y:]) + min_std
    return mean, std


# ----------------------------- main --------------------------------------------

# TODO(synk): nll_loss (torch.distributions.Normal log_prob) is not part of the
# forward pass and is left to plain JAX outside the kernel.

if __name__ == "__main__":
    d_x, d_y = 2, 1
    hidden_size = 32
    num_hidden_layers = 2
    min_std = 0.1

    key = jax.random.PRNGKey(0)
    k_obs, k_tgt, k_par, k_obs2, k_tgt2, k_msk2 = jax.random.split(key, 6)

    enc_params, qry_params = init_cnp_params(
        k_par, d_x, d_y, hidden_size, num_hidden_layers)

    # ---- test 1: small batch, mask=None, aligned shapes -----------------------
    batch, n_context, n_target = 2, 8, 8
    observation = jax.random.normal(k_obs, (batch, n_context, d_x + d_y),
                                    jnp.float32)
    target = jax.random.normal(k_tgt, (batch, n_target, d_x), jnp.float32)

    mean, std = cnp_forward(observation, target, None,
                            enc_params, qry_params, d_y, min_std)
    jax.block_until_ready((mean, std))

    mean_ref, std_ref = cnp_forward_ref(observation, target, None,
                                        enc_params, qry_params, d_y, min_std,
                                        matmul_dtype=jnp.bfloat16)
    assert mean.shape == (batch, n_target, d_y)
    assert std.shape == (batch, n_target, d_y)
    assert jnp.allclose(mean, mean_ref, atol=1e-2, rtol=1e-2)
    assert jnp.allclose(std, std_ref, atol=1e-2, rtol=1e-2)
    assert bool(jnp.all(std > 0))

    # ---- test 2: odd batch, non-multiple-of-8 lengths, partial mask -----------
    batch2, n_ctx2, n_tgt2 = 5, 10, 9
    obs2 = jax.random.normal(k_obs2, (batch2, n_ctx2, d_x + d_y), jnp.float32)
    tgt2 = jax.random.normal(k_tgt2, (batch2, n_tgt2, d_x), jnp.float32)
    msk2 = (jax.random.uniform(k_msk2, (batch2, n_ctx2)) > 0.3).astype(
        jnp.float32)
    msk2 = msk2.at[:, 0].set(1.0)   # at least one valid context point per row

    mean2, std2 = cnp_forward(obs2, tgt2, msk2, enc_params, qry_params,
                              d_y, min_std, b_blk=2)
    jax.block_until_ready((mean2, std2))
    mean2_ref, std2_ref = cnp_forward_ref(obs2, tgt2, msk2,
                                          enc_params, qry_params, d_y, min_std,
                                          matmul_dtype=jnp.bfloat16)
    assert mean2.shape == (batch2, n_tgt2, d_y)
    assert jnp.allclose(mean2, mean2_ref, atol=1e-2, rtol=1e-2)
    assert jnp.allclose(std2, std2_ref, atol=1e-2, rtol=1e-2)

    print("KERNEL_OK")
</pallas_src>

<mosaic_0001>
module attributes {stable_mosaic.version = 11 : i64} {
  func.func @kernel(%arg0: i32, %arg1: memref<1x8x3xbf16, #tpu.memory_space<vmem>>, %arg2: memref<1x8x2xbf16, #tpu.memory_space<vmem>>, %arg3: memref<1x8x1xf32, #tpu.memory_space<vmem>>, %arg4: memref<1x1x1xf32, #tpu.memory_space<vmem>>, %arg5: memref<3x32xbf16, #tpu.memory_space<vmem>>, %arg6: memref<1x32xf32, #tpu.memory_space<vmem>>, %arg7: memref<32x32xbf16, #tpu.memory_space<vmem>>, %arg8: memref<1x32xf32, #tpu.memory_space<vmem>>, %arg9: memref<32x32xbf16, #tpu.memory_space<vmem>>, %arg10: memref<1x32xf32, #tpu.memory_space<vmem>>, %arg11: memref<32x32xbf16, #tpu.memory_space<vmem>>, %arg12: memref<2x32xbf16, #tpu.memory_space<vmem>>, %arg13: memref<1x32xf32, #tpu.memory_space<vmem>>, %arg14: memref<32x32xbf16, #tpu.memory_space<vmem>>, %arg15: memref<1x32xf32, #tpu.memory_space<vmem>>, %arg16: memref<32x128xbf16, #tpu.memory_space<vmem>>, %arg17: memref<1x128xf32, #tpu.memory_space<vmem>>, %arg18: memref<1x8x128xf32, #tpu.memory_space<vmem>>) attributes {dimension_semantics = [#tpu.dimension_semantics<parallel>], iteration_bounds = array<i64: 2>, scalar_prefetch = 0 : i64, scratch_operands = 0 : i64, tpu.core_type = #tpu.core_type<tc>, window_params = [{transform_indices = @transform_0, window_bounds = array<i64: 1, 8, 3>}, {transform_indices = @transform_1, window_bounds = array<i64: 1, 8, 2>}, {transform_indices = @transform_2, window_bounds = array<i64: 1, 8, 1>}, {transform_indices = @transform_3, window_bounds = array<i64: 1, 1, 1>}, {pipeline_mode = #tpu.pipeline_mode<synchronous>, transform_indices = @transform_4, window_bounds = array<i64: 3, 32>}, {pipeline_mode = #tpu.pipeline_mode<synchronous>, transform_indices = @transform_5, window_bounds = array<i64: 1, 32>}, {pipeline_mode = #tpu.pipeline_mode<synchronous>, transform_indices = @transform_6, window_bounds = array<i64: 32, 32>}, {pipeline_mode = #tpu.pipeline_mode<synchronous>, transform_indices = @transform_7, window_bounds = array<i64: 1, 32>}, {pipeline_mode = #tpu.pipeline_mode<synchronous>, transform_indices = @transform_8, window_bounds = array<i64: 32, 32>}, {pipeline_mode = #tpu.pipeline_mode<synchronous>, transform_indices = @transform_9, window_bounds = array<i64: 1, 32>}, {pipeline_mode = #tpu.pipeline_mode<synchronous>, transform_indices = @transform_10, window_bounds = array<i64: 32, 32>}, {pipeline_mode = #tpu.pipeline_mode<synchronous>, transform_indices = @transform_11, window_bounds = array<i64: 2, 32>}, {pipeline_mode = #tpu.pipeline_mode<synchronous>, transform_indices = @transform_12, window_bounds = array<i64: 1, 32>}, {pipeline_mode = #tpu.pipeline_mode<synchronous>, transform_indices = @transform_13, window_bounds = array<i64: 32, 32>}, {pipeline_mode = #tpu.pipeline_mode<synchronous>, transform_indices = @transform_14, window_bounds = array<i64: 1, 32>}, {pipeline_mode = #tpu.pipeline_mode<synchronous>, transform_indices = @transform_15, window_bounds = array<i64: 32, 128>}, {pipeline_mode = #tpu.pipeline_mode<synchronous>, transform_indices = @transform_16, window_bounds = array<i64: 1, 128>}, {transform_indices = @transform_17, window_bounds = array<i64: 1, 8, 128>}]} {
    %c0 = arith.constant 0 : index
    %c0_0 = arith.constant 0 : index
    %c0_1 = arith.constant 0 : index
    %0 = vector.load %arg1[%c0, %c0_0, %c0_1] : memref<1x8x3xbf16, #tpu.memory_space<vmem>>, vector<1x8x3xbf16>
    %1 = vector.shape_cast %0 : vector<1x8x3xbf16> to vector<8x3xbf16>
    %c0_2 = arith.constant 0 : index
    %c0_3 = arith.constant 0 : index
    %2 = vector.load %arg5[%c0_2, %c0_3] : memref<3x32xbf16, #tpu.memory_space<vmem>>, vector<3x32xbf16>
    %c0_4 = arith.constant 0 : index
    %c0_5 = arith.constant 0 : index
    %3 = vector.load %arg6[%c0_4, %c0_5] : memref<1x32xf32, #tpu.memory_space<vmem>>, vector<1x32xf32>
    %cst = arith.constant dense<0.000000e+00> : vector<8x32xf32>
    %4 = tpu.matmul %1, %2, %cst {dimension_numbers = #tpu.dot_dimension_numbers<[1], [0], [0], [1], [0, 0, 1, 1], [], []>} : vector<8x3xbf16>, vector<3x32xbf16>, vector<8x32xf32> -> vector<8x32xf32>
    %5 = vector.broadcast %3 : vector<1x32xf32> to vector<8x32xf32>
    %6 = arith.addf %4, %5 : vector<8x32xf32>
    %cst_6 = arith.constant 0.000000e+00 : f32
    %7 = vector.broadcast %cst_6 : f32 to vector<8x32xf32>
    %8 = arith.maximumf %6, %7 : vector<8x32xf32>
    %9 = arith.truncf %8 : vector<8x32xf32> to vector<8x32xbf16>
    %c0_7 = arith.constant 0 : index
    %c0_8 = arith.constant 0 : index
    %10 = vector.load %arg7[%c0_7, %c0_8] : memref<32x32xbf16, #tpu.memory_space<vmem>>, vector<32x32xbf16>
    %c0_9 = arith.constant 0 : index
    %c0_10 = arith.constant 0 : index
    %11 = vector.load %arg8[%c0_9, %c0_10] : memref<1x32xf32, #tpu.memory_space<vmem>>, vector<1x32xf32>
    %cst_11 = arith.constant dense<0.000000e+00> : vector<8x32xf32>
    %12 = tpu.matmul %9, %10, %cst_11 {dimension_numbers = #tpu.dot_dimension_numbers<[1], [0], [0], [1], [0, 0, 1, 1], [], []>} : vector<8x32xbf16>, vector<32x32xbf16>, vector<8x32xf32> -> vector<8x32xf32>
    %13 = vector.broadcast %11 : vector<1x32xf32> to vector<8x32xf32>
    %14 = arith.addf %12, %13 : vector<8x32xf32>
    %cst_12 = arith.constant 0.000000e+00 : f32
    %15 = vector.broadcast %cst_12 : f32 to vector<8x32xf32>
    %16 = arith.maximumf %14, %15 : vector<8x32xf32>
    %17 = arith.truncf %16 : vector<8x32xf32> to vector<8x32xbf16>
    %c0_13 = arith.constant 0 : index
    %c0_14 = arith.constant 0 : index
    %18 = vector.load %arg9[%c0_13, %c0_14] : memref<32x32xbf16, #tpu.memory_space<vmem>>, vector<32x32xbf16>
    %c0_15 = arith.constant 0 : index
    %c0_16 = arith.constant 0 : index
    %19 = vector.load %arg10[%c0_15, %c0_16] : memref<1x32xf32, #tpu.memory_space<vmem>>, vector<1x32xf32>
    %cst_17 = arith.constant dense<0.000000e+00> : vector<8x32xf32>
    %20 = tpu.matmul %17, %18, %cst_17 {dimension_numbers = #tpu.dot_dimension_numbers<[1], [0], [0], [1], [0, 0, 1, 1], [], []>} : vector<8x32xbf16>, vector<32x32xbf16>, vector<8x32xf32> -> vector<8x32xf32>
    %21 = vector.broadcast %19 : vector<1x32xf32> to vector<8x32xf32>
    %22 = arith.addf %20, %21 : vector<8x32xf32>
    %c0_18 = arith.constant 0 : index
    %c0_19 = arith.constant 0 : index
    %c0_20 = arith.constant 0 : index
    %23 = vector.load %arg3[%c0_18, %c0_19, %c0_20] : memref<1x8x1xf32, #tpu.memory_space<vmem>>, vector<1x8x1xf32>
    %24 = vector.shape_cast %23 : vector<1x8x1xf32> to vector<8x1xf32>
    %25 = vector.broadcast %24 : vector<8x1xf32> to vector<8x32xf32>
    %26 = arith.mulf %22, %25 : vector<8x32xf32>
    %27 = vector.shape_cast %26 : vector<8x32xf32> to vector<1x8x32xf32>
    %cst_21 = arith.constant dense<0.000000e+00> : vector<1x32xf32>
    %28 = vector.multi_reduction <add>, %27, %cst_21 [1] : vector<1x8x32xf32> to vector<1x32xf32>
    %c0_22 = arith.constant 0 : index
    %c0_23 = arith.constant 0 : index
    %c0_24 = arith.constant 0 : index
    %29 = vector.load %arg4[%c0_22, %c0_23, %c0_24] : memref<1x1x1xf32, #tpu.memory_space<vmem>>, vector<1x1x1xf32>
    %30 = vector.shape_cast %29 : vector<1x1x1xf32> to vector<1x1xf32>
    %31 = vector.broadcast %30 : vector<1x1xf32> to vector<1x32xf32>
    %32 = arith.mulf %28, %31 : vector<1x32xf32>
    %c0_25 = arith.constant 0 : index
    %c0_26 = arith.constant 0 : index
    %33 = vector.load %arg11[%c0_25, %c0_26] : memref<32x32xbf16, #tpu.memory_space<vmem>>, vector<32x32xbf16>
    %c0_27 = arith.constant 0 : index
    %c0_28 = arith.constant 0 : index
    %34 = vector.load %arg13[%c0_27, %c0_28] : memref<1x32xf32, #tpu.memory_space<vmem>>, vector<1x32xf32>
    %35 = arith.truncf %32 : vector<1x32xf32> to vector<1x32xbf16>
    %cst_29 = arith.constant dense<0.000000e+00> : vector<1x32xf32>
    %36 = tpu.matmul %35, %33, %cst_29 {dimension_numbers = #tpu.dot_dimension_numbers<[1], [0], [0], [1], [0, 0, 1, 1], [], []>} : vector<1x32xbf16>, vector<32x32xbf16>, vector<1x32xf32> -> vector<1x32xf32>
    %37 = arith.addf %36, %34 : vector<1x32xf32>
    %38 = vector.shape_cast %37 : vector<1x32xf32> to vector<1x1x32xf32>
    %39 = vector.shape_cast %38 : vector<1x1x32xf32> to vector<1x1x32xf32>
    %40 = vector.broadcast %39 : vector<1x1x32xf32> to vector<1x8x32xf32>
    %41 = vector.shape_cast %40 : vector<1x8x32xf32> to vector<8x32xf32>
    %c0_30 = arith.constant 0 : index
    %c0_31 = arith.constant 0 : index
    %c0_32 = arith.constant 0 : index
    %42 = vector.load %arg2[%c0_30, %c0_31, %c0_32] : memref<1x8x2xbf16, #tpu.memory_space<vmem>>, vector<1x8x2xbf16>
    %43 = vector.shape_cast %42 : vector<1x8x2xbf16> to vector<8x2xbf16>
    %44 = arith.extf %43 : vector<8x2xbf16> to vector<8x2xf32>
    %c0_33 = arith.constant 0 : index
    %c0_34 = arith.constant 0 : index
    %45 = vector.load %arg12[%c0_33, %c0_34] : memref<2x32xbf16, #tpu.memory_space<vmem>>, vector<2x32xbf16>
    %46 = arith.extf %45 : vector<2x32xbf16> to vector<2x32xf32>
    %47 = vector.extract_strided_slice %44 {offsets = [0, 0], sizes = [8, 1], strides = [1, 1]} : vector<8x2xf32> to vector<8x1xf32>
    %48 = vector.extract_strided_slice %46 {offsets = [0, 0], sizes = [1, 32], strides = [1, 1]} : vector<2x32xf32> to vector<1x32xf32>
    %49 = vector.broadcast %47 : vector<8x1xf32> to vector<8x32xf32>
    %50 = vector.broadcast %48 : vector<1x32xf32> to vector<8x32xf32>
    %51 = arith.mulf %49, %50 : vector<8x32xf32>
    %52 = arith.addf %41, %51 : vector<8x32xf32>
    %53 = vector.extract_strided_slice %44 {offsets = [0, 1], sizes = [8, 1], strides = [1, 1]} : vector<8x2xf32> to vector<8x1xf32>
    %54 = vector.extract_strided_slice %46 {offsets = [1, 0], sizes = [1, 32], strides = [1, 1]} : vector<2x32xf32> to vector<1x32xf32>
    %55 = vector.broadcast %53 : vector<8x1xf32> to vector<8x32xf32>
    %56 = vector.broadcast %54 : vector<1x32xf32> to vector<8x32xf32>
    %57 = arith.mulf %55, %56 : vector<8x32xf32>
    %58 = arith.addf %52, %57 : vector<8x32xf32>
    %cst_35 = arith.constant 0.000000e+00 : f32
    %59 = vector.broadcast %cst_35 : f32 to vector<8x32xf32>
    %60 = arith.maximumf %58, %59 : vector<8x32xf32>
    %c0_36 = arith.constant 0 : index
    %c0_37 = arith.constant 0 : index
    %61 = vector.load %arg14[%c0_36, %c0_37] : memref<32x32xbf16, #tpu.memory_space<vmem>>, vector<32x32xbf16>
    %c0_38 = arith.constant 0 : index
    %c0_39 = arith.constant 0 : index
    %62 = vector.load %arg15[%c0_38, %c0_39] : memref<1x32xf32, #tpu.memory_space<vmem>>, vector<1x32xf32>
    %63 = arith.truncf %60 : vector<8x32xf32> to vector<8x32xbf16>
    %cst_40 = arith.constant dense<0.000000e+00> : vector<8x32xf32>
    %64 = tpu.matmul %63, %61, %cst_40 {dimension_numbers = #tpu.dot_dimension_numbers<[1], [0], [0], [1], [0, 0, 1, 1], [], []>} : vector<8x32xbf16>, vector<32x32xbf16>, vector<8x32xf32> -> vector<8x32xf32>
    %65 = vector.broadcast %62 : vector<1x32xf32> to vector<8x32xf32>
    %66 = arith.addf %64, %65 : vector<8x32xf32>
    %cst_41 = arith.constant 0.000000e+00 : f32
    %67 = vector.broadcast %cst_41 : f32 to vector<8x32xf32>
    %68 = arith.maximumf %66, %67 : vector<8x32xf32>
    %c0_42 = arith.constant 0 : index
    %c0_43 = arith.constant 0 : index
    %69 = vector.load %arg16[%c0_42, %c0_43] : memref<32x128xbf16, #tpu.memory_space<vmem>>, vector<32x128xbf16>
    %c0_44 = arith.constant 0 : index
    %c0_45 = arith.constant 0 : index
    %70 = vector.load %arg17[%c0_44, %c0_45] : memref<1x128xf32, #tpu.memory_space<vmem>>, vector<1x128xf32>
    %71 = arith.truncf %68 : vector<8x32xf32> to vector<8x32xbf16>
    %cst_46 = arith.constant dense<0.000000e+00> : vector<8x128xf32>
    %72 = tpu.matmul %71, %69, %cst_46 {dimension_numbers = #tpu.dot_dimension_numbers<[1], [0], [0], [1], [0, 0, 1, 1], [], []>} : vector<8x32xbf16>, vector<32x128xbf16>, vector<8x128xf32> -> vector<8x128xf32>
    %73 = vector.broadcast %70 : vector<1x128xf32> to vector<8x128xf32>
    %74 = arith.addf %72, %73 : vector<8x128xf32>
    %75 = tpu.iota {dimensions = array<i32: 1>} : vector<8x128xi32>
    %c1_i32 = arith.constant 1 : i32
    %76 = vector.broadcast %c1_i32 : i32 to vector<8x128xi32>
    %77 = arith.cmpi slt, %75, %76 : vector<8x128xi32>
    %cst_47 = arith.constant 2.000000e+01 : f32
    %78 = vector.broadcast %cst_47 : f32 to vector<8x128xf32>
    %79 = arith.cmpf ogt, %74, %78 : vector<8x128xf32>
    %cst_48 = arith.constant 2.000000e+01 : f32
    %80 = vector.broadcast %cst_48 : f32 to vector<8x128xf32>
    %81 = arith.minimumf %74, %80 : vector<8x128xf32>
    %82 = math.exp %81 : vector<8x128xf32>
    %83 = math.log1p %82 : vector<8x128xf32>
    %84 = arith.select %79, %74, %83 : vector<8x128xi1>, vector<8x128xf32>
    %cst_49 = arith.constant 1.000000e-01 : f32
    %85 = vector.broadcast %cst_49 : f32 to vector<8x128xf32>
    %86 = arith.addf %84, %85 : vector<8x128xf32>
    %87 = arith.select %77, %74, %86 : vector<8x128xi1>, vector<8x128xf32>
    %c0_50 = arith.constant 0 : index
    %c0_51 = arith.constant 0 : index
    %c0_52 = arith.constant 0 : index
    %88 = vector.load %arg18[%c0_50, %c0_51, %c0_52] : memref<1x8x128xf32, #tpu.memory_space<vmem>>, vector<1x8x128xf32>
    %89 = vector.shape_cast %88 : vector<1x8x128xf32> to vector<8x128xf32>
    %90 = vector.shape_cast %87 : vector<8x128xf32> to vector<1x8x128xf32>
    tpu.vector_store %arg18[%c0_50, %c0_51, %c0_52], %90 {strides = array<i32>} : memref<1x8x128xf32, #tpu.memory_space<vmem>>, vector<1x8x128xf32>,
    return
  }
  func.func @transform_0(%arg0: i32) -> (i32, i32, i32) {
    %c0_i32 = arith.constant 0 : i32
    %c0_i32_0 = arith.constant 0 : i32
    %c0_i32_1 = arith.constant 0 : i32
    return %arg0, %c0_i32, %c0_i32_0 : i32, i32, i32
  }
  func.func @transform_1(%arg0: i32) -> (i32, i32, i32) {
    %c0_i32 = arith.constant 0 : i32
    %c0_i32_0 = arith.constant 0 : i32
    %c0_i32_1 = arith.constant 0 : i32
    return %arg0, %c0_i32, %c0_i32_0 : i32, i32, i32
  }
  func.func @transform_2(%arg0: i32) -> (i32, i32, i32) {
    %c0_i32 = arith.constant 0 : i32
    %c0_i32_0 = arith.constant 0 : i32
    %c0_i32_1 = arith.constant 0 : i32
    return %arg0, %c0_i32, %c0_i32_0 : i32, i32, i32
  }
  func.func @transform_3(%arg0: i32) -> (i32, i32, i32) {
    %c0_i32 = arith.constant 0 : i32
    %c0_i32_0 = arith.constant 0 : i32
    %c0_i32_1 = arith.constant 0 : i32
    return %arg0, %c0_i32, %c0_i32_0 : i32, i32, i32
  }
  func.func @transform_4(%arg0: i32) -> (i32, i32) {
    %c0_i32 = arith.constant 0 : i32
    %c0_i32_0 = arith.constant 0 : i32
    %c0_i32_1 = arith.constant 0 : i32
    return %c0_i32, %c0_i32_0 : i32, i32
  }
  func.func @transform_5(%arg0: i32) -> (i32, i32) {
    %c0_i32 = arith.constant 0 : i32
    %c0_i32_0 = arith.constant 0 : i32
    %c0_i32_1 = arith.constant 0 : i32
    return %c0_i32, %c0_i32_0 : i32, i32
  }
  func.func @transform_6(%arg0: i32) -> (i32, i32) {
    %c0_i32 = arith.constant 0 : i32
    %c0_i32_0 = arith.constant 0 : i32
    %c0_i32_1 = arith.constant 0 : i32
    return %c0_i32, %c0_i32_0 : i32, i32
  }
  func.func @transform_7(%arg0: i32) -> (i32, i32) {
    %c0_i32 = arith.constant 0 : i32
    %c0_i32_0 = arith.constant 0 : i32
    %c0_i32_1 = arith.constant 0 : i32
    return %c0_i32, %c0_i32_0 : i32, i32
  }
  func.func @transform_8(%arg0: i32) -> (i32, i32) {
    %c0_i32 = arith.constant 0 : i32
    %c0_i32_0 = arith.constant 0 : i32
    %c0_i32_1 = arith.constant 0 : i32
    return %c0_i32, %c0_i32_0 : i32, i32
  }
  func.func @transform_9(%arg0: i32) -> (i32, i32) {
    %c0_i32 = arith.constant 0 : i32
    %c0_i32_0 = arith.constant 0 : i32
    %c0_i32_1 = arith.constant 0 : i32
    return %c0_i32, %c0_i32_0 : i32, i32
  }
  func.func @transform_10(%arg0: i32) -> (i32, i32) {
    %c0_i32 = arith.constant 0 : i32
    %c0_i32_0 = arith.constant 0 : i32
    %c0_i32_1 = arith.constant 0 : i32
    return %c0_i32, %c0_i32_0 : i32, i32
  }
  func.func @transform_11(%arg0: i32) -> (i32, i32) {
    %c0_i32 = arith.constant 0 : i32
    %c0_i32_0 = arith.constant 0 : i32
    %c0_i32_1 = arith.constant 0 : i32
    return %c0_i32, %c0_i32_0 : i32, i32
  }
  func.func @transform_12(%arg0: i32) -> (i32, i32) {
    %c0_i32 = arith.constant 0 : i32
    %c0_i32_0 = arith.constant 0 : i32
    %c0_i32_1 = arith.constant 0 : i32
    return %c0_i32, %c0_i32_0 : i32, i32
  }
  func.func @transform_13(%arg0: i32) -> (i32, i32) {
    %c0_i32 = arith.constant 0 : i32
    %c0_i32_0 = arith.constant 0 : i32
    %c0_i32_1 = arith.constant 0 : i32
    return %c0_i32, %c0_i32_0 : i32, i32
  }
  func.func @transform_14(%arg0: i32) -> (i32, i32) {
    %c0_i32 = arith.constant 0 : i32
    %c0_i32_0 = arith.constant 0 : i32
    %c0_i32_1 = arith.constant 0 : i32
    return %c0_i32, %c0_i32_0 : i32, i32
  }
  func.func @transform_15(%arg0: i32) -> (i32, i32) {
    %c0_i32 = arith.constant 0 : i32
    %c0_i32_0 = arith.constant 0 : i32
    %c0_i32_1 = arith.constant 0 : i32
    return %c0_i32, %c0_i32_0 : i32, i32
  }
  func.func @transform_16(%arg0: i32) -> (i32, i32) {
    %c0_i32 = arith.constant 0 : i32
    %c0_i32_0 = arith.constant 0 : i32
    %c0_i32_1 = arith.constant 0 : i32
    return %c0_i32, %c0_i32_0 : i32, i32
  }
  func.func @transform_17(%arg0: i32) -> (i32, i32, i32) {
    %c0_i32 = arith.constant 0 : i32
    %c0_i32_0 = arith.constant 0 : i32
    %c0_i32_1 = arith.constant 0 : i32
    return %arg0, %c0_i32, %c0_i32_0 : i32, i32, i32
  }
}

</mosaic_0001>

<bundles_post_ra>
// kernel: tpu_custom_call.1
= control target key start
LH: loop header
LB: loop body
LE: loop exit
PB: predicated region body
PF: predicated region fallthrough
CT: control target
= control target key end

     0   :  { %s2065_s0 = inlined_call_operand.vmem [shape: bf16[2,8,3], index: 0, kind: input, shape index: {}]   ;;  %s2066_s1 = inlined_call_operand.vmem [shape: bf16[2,8,2], index: 1, kind: input, shape index: {}]   ;;  %s2067_s2 = inlined_call_operand.vmem [shape: f32[2,8,1], index: 2, kind: input, shape index: {}]   ;;  %s2068_s3 = inlined_call_operand.vmem [shape: f32[2,1,1], index: 3, kind: input, shape index: {}]   ;;  %s2069_s4 = inlined_call_operand.hbm [shape: bf16[3,32], index: 4, kind: input, shape index: {}]   ;;  %s2070_s5 = inlined_call_operand.hbm [shape: f32[1,32], index: 5, kind: input, shape index: {}]   ;;  %s2071_s6 = inlined_call_operand.vmem [shape: bf16[32,32], index: 6, kind: input, shape index: {}]   ;;  %s2072_s7 = inlined_call_operand.hbm [shape: f32[1,32], index: 7, kind: input, shape index: {}]   ;;  %s2073_s8 = inlined_call_operand.vmem [shape: bf16[32,32], index: 8, kind: input, shape index: {}]   ;;  %s2074_s9 = inlined_call_operand.hbm [shape: f32[1,32], index: 9, kind: input, shape index: {}]   ;;  %s2075_s10 = inlined_call_operand.vmem [shape: bf16[32,32], index: 10, kind: input, shape index: {}]   ;;  %s2076_s11 = inlined_call_operand.vmem [shape: bf16[2,32], index: 11, kind: input, shape index: {}]   ;;  %s2077_s12 = inlined_call_operand.vmem [shape: f32[1,32], index: 12, kind: input, shape index: {}]   ;;  %s2078_s13 = inlined_call_operand.vmem [shape: bf16[32,32], index: 13, kind: input, shape index: {}]   ;;  %s2079_s14 = inlined_call_operand.vmem [shape: f32[1,32], index: 14, kind: input, shape index: {}]   ;;  %s2080_s15 = inlined_call_operand.vmem [shape: bf16[32,128], index: 15, kind: input, shape index: {}]   ;;  %s2081_s16 = inlined_call_operand.vmem [shape: f32[1,128], index: 16, kind: input, shape index: {}]   ;;  %s2082_s17 = inlined_call_operand.hbm [shape: f32[2,8,128], index: 17, kind: output, shape index: {}]  }
   0x1   :  { %2095 = sst [smem:[#allocation22_spill]] %s2065_s0 }
   0x2   :  { %2096 = sst [smem:[#allocation23_spill]] %s2066_s1 }
   0x3   :  { %2097 = sst [smem:[#allocation24_spill]] %s2081_s16 }
   0x4   :  { %2098 = sst [smem:[#allocation25_spill]] %s2082_s17 }
   0x5   :  { %22 = vsyncpa [#allocation3], 0 }
   0x6   :  { %23 = vsyncpa [#allocation6], 0 }
   0x7   :  { %24 = vsyncpa [#allocation9], 0 }
   0x8   :  { %25 = vsyncpa [#allocation4], 0 }
   0x9   :  { %27 = vsyncpa [#allocation4 + $0x1], 0  ;;  %s1754_s24 = smov 0   ;;  %s1756_s25 = smov 0  }
   0xa   :  { %s1758_s26 = smov 0   ;;  %s1760_s27 = smov 0  }
   0xb LB: > { %2099 = sst [smem:[#allocation15_spill]] %s1640_s24  ;;  %s1775_s28 = sadd.s32 4294967295, %s1652_s27   ;;  %s1652_s27 = sphi %s1760_s27, %s2129_s27   ;;  %s1648_s26 = sphi %s1758_s26, %s2131_s26   ;;  %s1644_s25 = sphi %s1756_s25, %s2133_s25   ;;  %s1640_s24 = sphi %s1754_s24, %s2132_s24  }
   0xc   : > { %2100 = sst [smem:[#allocation16_spill]] %s1648_s26  ;;  %s1259_s29 = sadd.s32 4294967294, %s1652_s27  }
   0xd   : > { %2101 = sst [smem:[#allocation17_spill]] %s1652_s27  ;;  %s1779_s0 = sadd.s32 1, %s1652_s27  }
   0xe   : > { %2102 = sst [smem:[#allocation18_spill]] %s1779_s0  ;;  %s417_s30 = sadd.s32 1, %s1648_s26 }
   0xf   : > { %s414_s18 = ssub.s32 %s1652_s27, %s1779_s0  ;;  %p427_p0 = scmp.ne.s32.totalorder %s1648_s26, %s1644_s25 }
  0x10   : > { %p415_p1 = scmp.eq.s32.totalorder %s414_s18, 0  ;;  %p428_p2 = scmp.eq.s32.totalorder %s1775_s28, 1 }
  0x11   : > { %p433_p3 = scmp.ne.s32.totalorder %s1644_s25, %s1640_s24  ;;  %p434_p4 = scmp.eq.s32.totalorder %s1259_s29, 1 }
  0x12   : > { %s1790_s19 = scalar_select %p415_p1, %s1648_s26, %s417_s30  }
  0x13   : > { %p1792_p5 = por %p428_p2, %p427_p0  ;;  %p1796_p6 = por %p434_p4, %p433_p3 }
  0x14   : > { %2103 = sst [smem:[#allocation19_spill]] %s1790_s19  ;;  %p1260_p7 = scmp.ge.s32.totalorder %s1652_s27, 1 }
  0x15   : > { %s2104_s1 = scalar_select %p1792_p5, 1, 0 }
  0x16   : > { %s2106_s20 = scalar_select %p1796_p6, 1, 0 }
  0x17   : > { %2105 = sst [smem:[#allocation20_spill]] %s2104_s1  ;;  %p441_p8 = scmp.lt.s32.totalorder %s1652_s27, 3 }
  0x18   : > { %2107 = sst [smem:[#allocation21_spill]] %s2106_s20  ;;  %p2090_p9 = scmp.eq.s32.totalorder %s1775_s28, 0 }
  0x19   : > { %p1803_p10 = pnand %p1260_p7, %p441_p8  ;;  %s1654_s22 = smov [#allocation5]  }
  0x1a   : > { %s465_s23 = sshll.u32 %s1654_s22, 4  ;;  %s1655_s29 = smov [#allocation2]   ;;  %s466_s23 = int_to_ptr.vmem [resolvable:$true] %s465_s23 }
  0x1b   : > { %s2108_s21 = scalar_select %p1803_p10, 1, 0 }
  0x1c   : > { %p1381_p11 = pneg %p1803_p10  ;;  %s454_s30 = sshll.u32 %s1655_s29, 4  ;;  %s1815_s30 = int_to_ptr.vmem [resolvable:$true] %s454_s30 }
  0x1d   : > { %s1656_s19 = smov [#allocation7]   ;;  %s1466_s22 = scalar_lea.hbm %s2070_s5, 16 }
  0x1e   : > { %p1811_p12 = pnand %p2090_p9, %p1381_p11  ;;  %s479_s26 = sshll.u32 %s1656_s19, 4  ;;  %s1817_s26 = int_to_ptr.vmem [resolvable:$true] %s479_s26 }
  0x1f   : > { %p1467_p13 = scmp.ne.s32.totalorder %s2070_s5, %s1466_s22  ;;  %p1473_p3 = scmp.lt.u32.totalorder %s1466_s22, %s2070_s5 }
  0x20   : > { %p1827_p0 = pneg %p1811_p12 }
  0x22   : > { %p1469_p1 = pnand %p1827_p0, %p1467_p13 }
  0x24   : > { %p1470_p2 = pneg %p1469_p1 }
  0x26   : > { %p1475_p4 = pnand %p1473_p3, %p1470_p2 }
  0x28   : > { %1478 = shalt.err (!%p1475_p4)
}
  0x29   : > { %s1479_s0 = scalar_lea.vmem %s466_s23, 16  ;;  %s1486_s24 = scalar_lea.vmem %s466_s23, 32 }
  0x2a   : > { %p1480_p7 = scmp.ne.s32.totalorder %s466_s23, %s1479_s0  ;;  %p1487_p9 = scmp.lt.s32.totalorder %s466_s23, %s466_s23 }
  0x2b   : > { %p1488_p6 = scmp.lt.s32.totalorder %s1486_s24, %s1479_s0 }
  0x2c   : > { %p1482_p8 = pnand %p1480_p7, %p1827_p0 }
  0x2d   : > { %p1489_p5 = por %p1488_p6, %p1487_p9 }
  0x2e   : > { %p1483_p11 = pneg %p1482_p8 }
  0x30   : > { %p1490_p10 = pnand %p1489_p5, %p1483_p11 }
  0x32   : > { %1493 = shalt.err (!%p1490_p10)
}
  0x33   : > { %1387 = dma.hbm_to_vmem [thread:$0]  (!%p1811_p12), %s2070_s5, 16, %s466_s23, [#allocation6]  }
  0x34   : > { %s1494_s19 = scalar_lea.hbm %s2069_s4, 32 }
  0x35   : > { %p1495_p13 = scmp.ne.s32.totalorder %s2069_s4, %s1494_s19  ;;  %p1501_p5 = scmp.lt.u32.totalorder %s1494_s19, %s2069_s4 }
  0x37   : > { %p1497_p1 = pnand %p1495_p13, %p1827_p0 }
  0x39   : > { %p1498_p6 = pneg %p1497_p1 }
  0x3b   : > { %p1503_p9 = pnand %p1501_p5, %p1498_p6 }
  0x3d   : > { %1506 = shalt.err (!%p1503_p9)
}
  0x3e   : > { %s1507_s23 = scalar_lea.vmem %s1815_s30, 32  ;;  %p1515_p4 = scmp.lt.s32.totalorder %s1815_s30, %s1815_s30 }
  0x3f   : > { %p1508_p10 = scmp.ne.s32.totalorder %s1815_s30, %s1507_s23  ;;  %p1516_p7 = scmp.lt.s32.totalorder %s1507_s23, %s1507_s23 }
  0x41   : > { %p1510_p2 = pnand %p1508_p10, %p1827_p0  ;;  %p1517_p8 = por %p1516_p7, %p1515_p4 }
  0x43   : > { %p1511_p3 = pneg %p1510_p2 }
  0x45   : > { %p1518_p11 = pnand %p1517_p8, %p1511_p3 }
  0x47   : > { %1521 = shalt.err (!%p1518_p11)
}
  0x48   : > { %1384 = dma.hbm_to_vmem [thread:$0]  (!%p1811_p12), %s2069_s4, 32, %s1815_s30, [#allocation3]  }
  0x49   : > { %s1522_s17 = scalar_lea.hbm %s2072_s7, 16 }
  0x4a   : > { %p1523_p13 = scmp.ne.s32.totalorder %s2072_s7, %s1522_s17  ;;  %p1529_p5 = scmp.lt.u32.totalorder %s1522_s17, %s2072_s7 }
  0x4c   : > { %p1525_p1 = pnand %p1523_p13, %p1827_p0 }
  0x4e   : > { %p1526_p6 = pneg %p1525_p1 }
  0x50   : > { %p1531_p9 = pnand %p1529_p5, %p1526_p6 }
  0x52   : > { %1534 = shalt.err (!%p1531_p9)
}
  0x53   : > { %s1535_s30 = scalar_lea.vmem %s1817_s26, 16  ;;  %s1542_s23 = scalar_lea.vmem %s1817_s26, 32 }
  0x54   : > { %p1536_p10 = scmp.ne.s32.totalorder %s1817_s26, %s1535_s30  ;;  %p1543_p4 = scmp.lt.s32.totalorder %s1817_s26, %s1817_s26 }
  0x55   : > { %p1544_p7 = scmp.lt.s32.totalorder %s1542_s23, %s1535_s30 }
  0x56   : > { %p1538_p2 = pnand %p1536_p10, %p1827_p0 }
  0x57   : > { %p1545_p8 = por %p1544_p7, %p1543_p4 }
  0x58   : > { %p1539_p3 = pneg %p1538_p2 }
  0x5a   : > { %p1546_p11 = pnand %p1545_p8, %p1539_p3 }
  0x5c   : > { %1549 = shalt.err (!%p1546_p11)
}
  0x5d   : > { %1390 = dma.hbm_to_vmem [thread:$0]  (!%p1811_p12), %s2072_s7, 16, %s1817_s26, [#allocation6]  }
  0x5e   : > { %s1657_s27 = smov [#allocation8]   ;;  %s1550_s19 = scalar_lea.hbm %s2074_s9, 16 }
  0x5f   : > { %s493_s20 = sshll.u32 %s1657_s27, 4  ;;  %p1551_p13 = scmp.ne.s32.totalorder %s2074_s9, %s1550_s19  ;;  %s494_s20 = int_to_ptr.vmem [resolvable:$true] %s493_s20 }
  0x60   : > { %p1557_p5 = scmp.lt.u32.totalorder %s1550_s19, %s2074_s9 }
  0x61   : > { %p1553_p1 = pnand %p1551_p13, %p1827_p0 }
  0x63   : > { %p1554_p6 = pneg %p1553_p1 }
  0x65   : > { %p1559_p9 = pnand %p1557_p5, %p1554_p6 }
  0x67   : > { %1562 = shalt.err (!%p1559_p9)
}
  0x68   : > { %s1563_s26 = scalar_lea.vmem %s494_s20, 16  ;;  %s1570_s16 = scalar_lea.vmem %s494_s20, 32 }
  0x69   : > { %p1564_p10 = scmp.ne.s32.totalorder %s494_s20, %s1563_s26  ;;  %p1571_p4 = scmp.lt.s32.totalorder %s494_s20, %s494_s20 }
  0x6a   : > { %p1572_p7 = scmp.lt.s32.totalorder %s1570_s16, %s1563_s26 }
  0x6b   : > { %p1566_p2 = pnand %p1564_p10, %p1827_p0 }
  0x6c   : > { %p1573_p8 = por %p1572_p7, %p1571_p4 }
  0x6d   : > { %p1567_p3 = pneg %p1566_p2 }
  0x6f   : > { %p1574_p11 = pnand %p1573_p8, %p1567_p3 }
  0x71   : > { %1577 = shalt.err (!%p1574_p11)
}
  0x72   : > { %1393 = dma.hbm_to_vmem [thread:$0]  (!%p1811_p12), %s2074_s9, 16, %s494_s20, [#allocation9]  }
  0x73   : > { %p2111_p13 = scmp.ne.s32.totalorder %s2108_s21, 0 }
  0x74   : > { %p2112_p1 = scmp.eq.s32.totalorder (!%p2111_p13), %s1775_s28, 0 }
  0x75   : > { %554 = sbr.rel (%p2111_p13) target bundleno = 1515 (0x5eb), region = 88 }
  0x7c   : > { %1623 = dma.done.wait (%p2112_p1), [#allocation3], 32   ;;  %p2113_p0 = pmov %p2112_p1 }
  0x7e   : > { %1625 = vsyncadd (%p2113_p0), [#allocation3], 4294967264  ;;  %p2114_p6 = pmov %p2113_p0 }
  0x7f   : > { %p2115_p5 = pmov %p2113_p0 }
  0x80   : > { %1627 = dma.done.wait (%p2114_p6), [#allocation6], 32  }
  0x81   : > { %1629 = vsyncadd (%p2115_p5), [#allocation6], 4294967264  ;;  %p2116_p9 = pmov %p2113_p0 }
  0x82   : > { %p2117_p12 = pmov %p2113_p0 }
  0x83   : > { %1631 = dma.done.wait (%p2116_p9), [#allocation9], 16  }
  0x84   : > { %1633 = vsyncadd (%p2117_p12), [#allocation9], 4294967280  ;;  %vm657_vm0 = vcmask 1040384   ;;  %v1658_v0 = vmov 0.0   ;;  %p628_p10 = scmp.lt.s32.totalorder %s1775_s28, 1  ;;  %vm658_vm1 = vcmask 1041408   ;;  %v861_v43 = vlaneseq }
  0x85   : > { %1317 = vmatprep.subr.bf16.mxu0 %v1658_v0  ;;  %1323 = vmatprep.subr.bf16.mxu1 %v1658_v0  ;;  %v1659_v1 = vmov 65535   ;;  %vm1660_vm2 = vmmov 0   ;;  %s2118_s17 = sld [smem:[#allocation22_spill]]  ;;  %v645_v4 = vld [vmem:[#allocation2] sm:$0x3]  ;;  %vm653_vm3 = vcmask 23552  }
  0x86   : > { %v659_v2 = vsel %vm657_vm0, 4294967295, %v1659_v1  ;;  %1319 = vmatprep.mubr.msk.bf16.mxu0 %vm1660_vm2, %v1658_v0  ;;  %1327 = vmatprep.mubr.msk.bf16.mxu1 %vm1660_vm2, %v1658_v0  ;;  %s1930_s21 = scalar_select %p628_p10, %s1775_s28, 1  ;;  %v1452_v7 = vld [vmem:[%s2071_s6] sm:$0xff]   ;;  %v1453_v8 = vld [vmem:[%s2071_s6 + $0x8] sm:$0xff]   ;;  %vm729_vm4 = vcmask 261120   ;;  %v1661_v19 = vmov 0  }
  0x87   : > { %v660_v3 = vsel %vm658_vm1, %v659_v2, 0  ;;  %1324 = vmatpush3.bf16.msra.mxu1 %v1452_v7  ;;  %v1454_v9 = vld [vmem:[%s2073_s8] sm:$0xff]   ;;  %v1455_v18 = vld [vmem:[%s2073_s8 + $0x8] sm:$0xff]   ;;  %1448 = vset.pattern.permute.xlu0 %v1661_v19  ;;  %v1662_v33 = vmov 1   ;;  %v862_v47 = vshrl.u32 %v861_v43, 7  ;;  %s625_s20 = sand.u32 1, %s1644_s25  }
  0x88   : > { %s1272_s18 = sshll.u32 %s1930_s21, 2  ;;  %v662_v5 = vand.u32 %v660_v3, %v645_v4  ;;  %1325 = vmatprep.subr.bf16.mxu1 %v1658_v0  ;;  %v1275_v10 = vld [vmem:[#allocation5] ss:$0 sm:$0xff]  ;;  %s1274_s27 = sshll.u32 %s1930_s21, 3  ;;  %1449 = vset.pattern.permute.xlu1 %v1661_v19  ;;  %v1277_v22 = vld [vmem:[#allocation7] ss:$0 sm:$0xff] }
  0x89   : > { %s642_s0 = scalar_lea.vmem %s2068_s3, %s1930_s21  ;;  %v1456_v30 = vld [vmem:[%s2075_s10] sm:$0xff]   ;;  %v1457_v31 = vld [vmem:[%s2075_s10 + $0x8] sm:$0xff]   ;;  %v863_v49 = vsub.s32 0, %v862_v47  ;;  %v952_v63 = vsub.s32 1, %v862_v47  ;;  %s1297_s19 = sshll.u32 %s1775_s28, 7 }
  0x8a   : > { %1318 = vmatpush3.bf16.msra.mxu0 %v662_v5  ;;  %v855_v21 = vld [vmem:[%s642_s0] sm:$0x1]  ;;  %v1281_v35 = vld [vmem:[#allocation8] ss:$0 sm:$0xff]  ;;  %v1459_v58 = vld [vmem:[%s2078_s13 + $0x8] sm:$0xff]   ;;  %s2122_s26 = sld [smem:[#allocation25_spill]] }
  0x8b   : > { %s631_s22 = scalar_lea.vmem %s2118_s17, %s1272_s18  ;;  %1331 = vmatprep.subr.bf16.mxu0 %v1658_v0  ;;  %1326 = vmatpush3.bf16.msra.mxu1 %v1453_v8  ;;  %s639_s17 = scalar_lea.vmem %s2067_s2, %s1274_s27  ;;  %v1458_v57 = vld [vmem:[%s2078_s13] sm:$0xff]  }
  0x8c   : > { %v644_v6 = vld [vmem:[%s631_s22] sm:$0xf]  ;;  %1339 = vmatprep.subr.bf16.mxu1 %v1658_v0  ;;  %s2119_s27 = sld [smem:[#allocation23_spill]]  ;;  %s1663_s28 = smov [#allocation10]  }
  0x8d   : > { %1320 = vmatmul.mubr.msk.bf16.vlgmr.msra.gmra.mrb[0].mxu0 %vm653_vm3, %v644_v6  ;;  %v841_v20 = vld [vmem:[%s639_s17] sm:$0xff]  ;;  %s1271_s17 = sshll.u32 %s625_s20, 3  ;;  %s2121_s22 = sld [smem:[#allocation20_spill]] }
  0x8e   : > { %1335 = vmatprep.mubr.msk.bf16.mxu0 %vm1660_vm2, %v1658_v0  ;;  %1332 = vmatpush3.bf16.msra.mxu0 %v1454_v9  ;;  %v1460_v59 = vld [vmem:[%s2080_s15] sm:$0xff]   ;;  %s627_s0 = scalar_lea.vmem [#allocation10], %s1271_s17  ;;  %s1582_s21 = sshll.u32 %s1663_s28, 4  ;;  %s1583_s21 = int_to_ptr.vmem [resolvable:$false] %s1582_s21 }
  0x8f   : > { %1333 = vmatprep.subr.bf16.mxu0 %v1658_v0  ;;  %844 = vperm.xlu0 %1448, %v841_v20   ;;  %v933_v60 = vld [vmem:[%s2076_s11] sm:$0x1]  ;;  %s1126_s24 = sshll.u32 %s627_s0, 4  ;;  %s2025_s24 = int_to_ptr.vmem [resolvable:$true] %s1126_s24 }
  0x90   : > { %v934_v62 = vunpack.c.l.bf16 %v933_v60  ;;  %v870_v1 = vld [vmem:[%s2077_s12] sm:$0x1]  ;;  %s2123_s16 = smov %s2122_s26  ;;  %s2023_s1 = scalar_lea.hbm %s2122_s26, %s1297_s19 }
  0x91   : > { %p1585_p8 = scmp.lt.s32.totalorder %s2025_s24, %s1583_s21 }
  0x92   : > { %1334 = vmatpush3.bf16.msra.mxu0 %v1455_v18  ;;  %s635_s29 = scalar_lea.vmem %s2119_s27, %s1272_s18  ;;  %v943_v2 = vrot.slane %v934_v62, %v863_v49  ;;  %v953_v3 = vrot.slane %v934_v62, %v952_v63  ;;  %s2120_s18 = sld [smem:[#allocation24_spill]] }
  0x93   : > { %1347 = vmatprep.subr.bf16.mxu0 %v1658_v0  ;;  %858 = vperm.xlu0 %1448, %v855_v21   ;;  %v931_v32 = vld [vmem:[%s635_s29] sm:$0xf]  ;;  %s1113_s27 = scalar_lea.sflag [#allocation4], %s625_s20  ;;  %s1578_s29 = scalar_lea.vmem %s2025_s24, 128 }
  0x94   : > { %v932_v34 = vunpack.c.l.bf16 %v931_v32  ;;  %p1579_p2 = scmp.ne.s32.totalorder %s2025_s24, %s1578_s29  ;;  %p2124_p3 = scmp.ne.s32.totalorder %s2121_s22, 0 }
  0x96   : > { %937 = vperm.xlu1 %1449, %v932_v34   ;;  %p1580_p4 = pnand %p1579_p2, %p2124_p3 }
  0x97   : > { %1451 = vset.pattern.permute.xlu0 %v1662_v33 }
  0x98   : > { %p1581_p7 = pneg %p1580_p4 }
  0x9a   : > { %1450 = vset.pattern.permute.xlu1 %v1662_v33 }
  0x9b   : > { %947 = vperm.xlu1 %1450, %v932_v34  }
 0x10e   : > { %v845_v39 = vpop.permute.xlu0 %844 }
 0x112   : > { %v859_v51 = vpop.permute.xlu0 %858 }
 0x113   : > { %v864_v54 = vrot.slane %v859_v51, %v863_v49 }
 0x115   : > { %v938_v61 = vpop.permute.xlu1 %937 }
 0x116   : > { %v944_v9 = vmul.f32 %v943_v2, %v938_v61 }
 0x11a   : > { %v948_v5 = vpop.permute.xlu1 %947 }
 0x160   : > { %v698_v11 = vpop.f32.mrb[0].mxu0 }
 0x161   : > { %v699_v12 = vadd.f32 %v1275_v10, %v698_v11  ;;  %v1321_v13 = vpop.f32.mrb[1].mxu0  ;;  %v954_v11 = vmul.f32 %v953_v3, %v948_v5 }
 0x162   : > { %v701_v14 = vpop.f32.mrb[2].mxu0 }
 0x163   : > { %v704_v15 = vmax.f32 %v699_v12, 0.0  ;;  %v1322_v16 = vpop.f32.mrb[3].mxu0 }
 0x164   : > { %v1461_v16 = vld [vmem:[%s2080_s15 + $0x8] sm:$0xff]  }
 0x165   : > { %v705_v17 = vpack.c.bf16 %v704_v15, %v704_v15 }
 0x167   : > { %1328 = vmatmul.mubr.msk.bf16.vlgmr.msra.gmra.mrb[0].mxu1 %vm729_vm4, %v705_v17  ;;  %v1288_v17 = vld [vmem:[%s2079_s14] ss:$0 sm:$0xff] }
 0x168   : > { %1343 = vmatprep.mubr.msk.bf16.mxu1 %vm1660_vm2, %v1658_v0  ;;  %1340 = vmatpush3.bf16.msra.mxu1 %v1456_v30 }
 0x169   : > { %1341 = vmatprep.subr.bf16.mxu1 %v1658_v0 }
 0x16c   : > { %1342 = vmatpush3.bf16.msra.mxu1 %v1457_v31 }
 0x16d   : > { %1355 = vmatprep.subr.bf16.mxu1 %v1658_v0 }
 0x23a   : > { %v767_v23 = vpop.f32.mrb[0].mxu1 }
 0x23b   : > { %v768_v24 = vadd.f32 %v1277_v22, %v767_v23  ;;  %v1329_v25 = vpop.f32.mrb[1].mxu1 }
 0x23c   : > { %v770_v26 = vpop.f32.mrb[2].mxu1  ;;  %v1292_v25 = vld [vmem:[%s2120_s18] ss:$0 sm:$0xff]  ;;  %s1584_s18 = scalar_lea.vmem %s1583_s21, 256 }
 0x23d   : > { %v773_v27 = vmax.f32 %v768_v24, 0.0  ;;  %v1330_v28 = vpop.f32.mrb[3].mxu1  ;;  %p1586_p11 = scmp.lt.s32.totalorder %s1584_s18, %s1578_s29 }
 0x23f   : > { %v774_v29 = vpack.c.bf16 %v773_v27, %v773_v27  ;;  %p1587_p13 = por %p1586_p11, %p1585_p8 }
 0x241   : > { %1336 = vmatmul.mubr.msk.bf16.vlgmr.msra.gmra.mrb[4].mxu0 %vm729_vm4, %v774_v29  ;;  %p1588_p1 = pnand %p1587_p13, %p1581_p7 }
 0x242   : > { %1351 = vmatprep.mubr.msk.bf16.mxu0 %vm1660_vm2, %v1658_v0  ;;  %1348 = vmatpush3.bf16.msra.mxu0 %v1458_v57 }
 0x243   : > { %1349 = vmatprep.subr.bf16.mxu0 %v1658_v0 }
 0x246   : > { %1350 = vmatpush3.bf16.msra.mxu0 %v1459_v58 }
 0x314   : > { %v835_v36 = vpop.f32.mrb[4].mxu0 }
 0x315   : > { %v836_v37 = vadd.f32 %v1281_v35, %v835_v36  ;;  %v1337_v38 = vpop.f32.mrb[5].mxu0 }
 0x316   : > { %v838_v40 = vpop.f32.mrb[6].mxu0 }
 0x317   : > { %v847_v41 = vmul.f32 %v845_v39, %v836_v37  ;;  %v1338_v42 = vpop.f32.mrb[7].mxu0  ;;  %v1093_v39 = vand.u32 127, %v861_v43 }
 0x319   : > { %v848_v44 = vsel %vm729_vm4, %v847_v41, 0.0  ;;  %vm1094_vm7 = vcmp.lt.s32.totalorder %v1093_v39, 1 }
 0x31a   : > { %v849_v45 = vrot.slane %v848_v44, 4 }
 0x31c   : > { %v850_v46 = vadd.f32 %v849_v45, %v848_v44 }
 0x31e   : > { %v851_v48 = vrot.slane %v850_v46, 2 }
 0x320   : > { %v852_v50 = vadd.f32 %v851_v48, %v850_v46 }
 0x322   : > { %v853_v52 = vrot.slane %v852_v50, 1 }
 0x324   : > { %v854_v53 = vadd.f32 %v853_v52, %v852_v50 }
 0x326   : > { %v865_v55 = vmul.f32 %v864_v54, %v854_v53 }
 0x328   : > { %v871_v56 = vpack.c.bf16 %v865_v55, %v865_v55 }
 0x32a   : > { %1344 = vmatmul.mubr.msk.bf16.vlgmr.msra.gmra.mrb[4].mxu1 %vm729_vm4, %v871_v56 }
 0x32b   : > { %1359 = vmatprep.mubr.msk.bf16.mxu1 %vm1660_vm2, %v1658_v0  ;;  %1356 = vmatpush3.bf16.msra.mxu1 %v1460_v59 }
 0x32c   : > { %1357 = vmatprep.subr.bf16.mxu1 %v1658_v0 }
 0x32f   : > { %1358 = vmatpush3.bf16.msra.mxu1 %v1461_v16 }
 0x3fd   : > { %v921_v4 = vpop.f32.mrb[4].mxu1 }
 0x3fe   : > { %v922_v6 = vadd.f32 %v921_v4, %v870_v1  ;;  %v1345_v7 = vpop.f32.mrb[5].mxu1 }
 0x3ff   : > { %v924_v8 = vpop.f32.mrb[6].mxu1 }
 0x400   : > { %v930_v0 = vrot.slane %v922_v6, %v863_v49  ;;  %v1346_v10 = vpop.f32.mrb[7].mxu1 }
 0x402   : > { %v945_v12 = vadd.f32 %v944_v9, %v930_v0 }
 0x404   : > { %v955_v13 = vadd.f32 %v954_v11, %v945_v12 }
 0x406   : > { %v956_v14 = vmax.f32 %v955_v13, 0.0 }
 0x408   : > { %v962_v15 = vpack.c.bf16 %v956_v14, %v956_v14 }
 0x40a   : > { %1352 = vmatmul.mubr.msk.bf16.vlgmr.msra.gmra.mrb[8].mxu0 %vm729_vm4, %v962_v15 }
 0x4dd   : > { %v1018_v18 = vpop.f32.mrb[8].mxu0 }
 0x4de   : > { %v1019_v19 = vadd.f32 %v1288_v17, %v1018_v18  ;;  %v1353_v20 = vpop.f32.mrb[9].mxu0 }
 0x4df   : > { %v1021_v21 = vpop.f32.mrb[10].mxu0 }
 0x4e0   : > { %v1024_v22 = vmax.f32 %v1019_v19, 0.0  ;;  %v1354_v23 = vpop.f32.mrb[11].mxu0 }
 0x4e2   : > { %v1030_v24 = vpack.c.bf16 %v1024_v22, %v1024_v22 }
 0x4e4   : > { %1360 = vmatmul.mubr.msk.bf16.vlgmr.msra.gmra.mrb[8].mxu1 %vm729_vm4, %v1030_v24 }
 0x5b7   : > { %v1086_v26 = vpop.f32.mrb[8].mxu1 }
 0x5b8   : > { %v1087_v27 = vadd.f32 %v1292_v25, %v1086_v26  ;;  %v1361_v28 = vpop.f32.mrb[9].mxu1 }
 0x5b9   : > { %v1089_v29 = vpop.f32.mrb[10].mxu1 }
 0x5ba   : > { %v1096_v30 = vmin.f32 %v1087_v27, 20.0  ;;  %v1362_v31 = vpop.f32.mrb[11].mxu1  ;;  %vm1095_vm6 = vcmp.gt.f32.partialorder %v1087_v27, 20.0 }
 0x5bc   : > { %v1097_v32 = vmul.f32 1.442695, %v1096_v30 }
 0x5be   : > { %1462 = vpow2.f32 %v1097_v32 }
 0x5c8   : > { %v1463_v33 = vpop.eup %1462 }
 0x5c9   : > { %v1099_v34 = vadd.f32 1.0, %v1463_v33  ;;  %v1102_v35 = vmul.f32 -0.5, %v1463_v33  ;;  %v1105_v37 = vand.u32 2147483647, %v1463_v33 }
 0x5cb   : > { %1464 = vlog2.f32 %v1099_v34  ;;  %v1103_v36 = vadd.f32 1.0, %v1102_v35  ;;  %vm1106_vm5 = vcmp.lt.f32.partialorder %v1105_v37, 0.0004427343 }
 0x5cd   : > { %v1104_v41 = vmul.f32 %v1463_v33, %v1103_v36 }
 0x5d5   : > { %v1465_v38 = vpop.eup %1464 }
 0x5d6   : > { %v1101_v40 = vmul.f32 0.6931472, %v1465_v38 }
 0x5d8   : > { %v1107_v42 = vsel %vm1106_vm5, %v1104_v41, %v1101_v40 }
 0x5d9   : > { %v1108_v44 = vsel %vm1095_vm6, %v1087_v27, %v1107_v42 }
 0x5da   : > { %v1109_v45 = vadd.f32 0.1, %v1108_v44 }
 0x5dc   : > { %v1110_v43 = vsel %vm1094_vm7, %v1087_v27, %v1109_v45 }
 0x5dd   : > { %1111 = vst [vmem:[%s627_s0] sm:$0xff] %v1110_v43 }
 0x5de   : > { %1591 = shalt.err (!%p1588_p1)
}
 0x5df   : > { %s1592_s20 = scalar_lea.hbm %s2023_s1, 128  ;;  %s1596_s0 = scalar_lea.hbm %s2123_s16, 256 }
 0x5e0   : > { %p1593_p0 = scmp.ne.s32.totalorder %s2023_s1, %s1592_s20  ;;  %p1597_p9 = scmp.lt.u32.totalorder %s2023_s1, %s2123_s16 }
 0x5e1   : > { %p1598_p12 = scmp.lt.u32.totalorder %s1596_s0, %s1592_s20  ;;  %p1600_p2 = scmp.lt.u32.totalorder %s1592_s20, %s2023_s1 }
 0x5e2   : > { %p1594_p6 = pnand %p1593_p0, %p2124_p3 }
 0x5e3   : > { %p1599_p10 = por %p1598_p12, %p1597_p9 }
 0x5e4   : > { %p1595_p5 = pneg %p1594_p6 }
 0x5e5   : > { %p1601_p4 = por %p1600_p2, %p1599_p10 }
 0x5e7   : > { %p1602_p7 = pnand %p1601_p4, %p1595_p5 }
 0x5e9   : > { %1605 = shalt.err (!%p1602_p7)
}
 0x5ea   : > { %1379 = dma.vmem_to_hbm [thread:$0]  (%p2124_p3), %s2025_s24, 128, %s2023_s1, %s1113_s27  }
 0x5eb PF: > { %s2125_s26 = sld [smem:[#allocation17_spill]]  ;;  %s2126_s29 = sld [smem:[#allocation15_spill]] }
 0x5ec   : > { %s2127_s28 = sld [smem:[#allocation21_spill]] }
 0x5f1   : > { %p1406_p8 = scmp.ge.s32.totalorder %s2125_s26, 2  ;;  %s1138_s21 = sand.u32 1, %s2126_s29  }
 0x5f2   : > { %p2128_p11 = scmp.ne.s32.totalorder %s2127_s28, 0  ;;  %s1139_s18 = scalar_lea.sflag [#allocation4], %s1138_s21 }
 0x5f4   : > { %p1395_p13 = pnand %p1406_p8, %p2128_p11 }
 0x5f6   : > { %1635 = dma.done.wait (!%p1395_p13), %s1139_s18, 128  }
 0x5f7   : > { %1637 = vsyncadd (!%p1395_p13), %s1139_s18, 4294967168  ;;  %s2129_s27 = sld [smem:[#allocation18_spill]]  ;;  %s2130_s20 = sld [smem:[#allocation16_spill]] }
 0x5f8   : > { %s2131_s26 = sld [smem:[#allocation19_spill]]  ;;  %s2132_s24 = smov %s1644_s25 }
 0x5fd   : > { %p30_p1 = scmp.ge.s32.totalorder %s2129_s27, 4   ;;  %s2133_s25 = smov %s2130_s20 }
 0x5ff   :  { %32 = sbr.rel (!%p30_p1) target bundleno = 11 (0xb), region = 149 }
 0x606   :  { %1144 = vsyncpa [#allocation3], 1 }
 0x607   :  { %1146 = vsyncpa [#allocation3 + $0x1], 1 }
 0x608   :  { %1147 = vsyncpa [#allocation6], 1 }
 0x609   :  { %1148 = vsyncpa [#allocation9], 1 }
 0x60a   :  { %1149 = vsyncpa [#allocation4], 1 }
 0x60b   :  { %1151 = vsyncpa [#allocation4 + $0x1], 1 }

</bundles_post_ra>
